<compile_context>
chip_gen: v7x
topology: tpu7x:2x2x1
jax: 0.10.0
libtpu: 0.0.40
codegen_flags: <defaults>
</compile_context>

<pallas_src>
import functools

import jax
import jax.numpy as jnp
from jax.experimental import pallas as pl
from jax.experimental.pallas import tpu as pltpu

HIDDEN_SIZE = 256
HEAD_PAD = 128           # fused (mean | log_std | zero-pad) head: one 128-lane tile
LOG_STD_MIN = -20.0
LOG_STD_MAX = 2.0


def actor_kernel(x_ref, w1_ref, w2_ref, wh_ref, b_ref, out_ref, *, action_dim):
    """One batch tile: x (TB, S) -> fused (TB, HEAD_PAD) = [mean | std | 0-pad] lanes."""
    cdt = w1_ref.dtype          # MXU operand dtype (bf16 by default)
    x = x_ref[...].astype(cdt)

    # Trunk: Linear -> ReLU -> Linear -> ReLU.  bf16 operands on the MXU,
    # f32 accumulation, f32 bias/ReLU epilogue (no bf16 VPU arithmetic).
    h1 = jnp.dot(x, w1_ref[...], preferred_element_type=jnp.float32) + b_ref[0:1, :]
    h1 = jnp.maximum(h1, 0.0)
    h2 = (jnp.dot(h1.astype(cdt), w2_ref[...], preferred_element_type=jnp.float32)
          + b_ref[1:2, :])
    h2 = jnp.maximum(h2, 0.0)

    # Fused heads: one MXU pass over the concatenated, zero-padded weight.
    fused = (jnp.dot(h2.astype(cdt), wh_ref[...], preferred_element_type=jnp.float32)
             + b_ref[2:3, :HEAD_PAD])

    # Lanes [0, A) hold mean, lanes [A, 2A) hold log_std; transform only those
    # lanes to std = exp(clip(log_std)) and emit one unmasked lane-dense store.
    lane = jax.lax.broadcasted_iota(jnp.int32, fused.shape, 1)
    is_log_std = (lane >= action_dim) & (lane < 2 * action_dim)
    std_vals = jnp.exp(jnp.clip(fused, LOG_STD_MIN, LOG_STD_MAX))
    out_ref[...] = jnp.where(is_log_std, std_vals, fused).astype(out_ref.dtype)


def pack_actor_params(params, action_dim, weight_dtype=jnp.bfloat16):
    """Host-side packing: fuse head weights (zero-padded to 128 lanes), pack all
    biases into one (3, 256) f32 slab, and store weights in the MXU operand dtype."""
    assert 2 * action_dim <= HEAD_PAD, "action_dim too large for a single 128-lane head tile"

    wh = jnp.zeros((HIDDEN_SIZE, HEAD_PAD), jnp.float32)
    wh = wh.at[:, :action_dim].set(params["wm"])
    wh = wh.at[:, action_dim:2 * action_dim].set(params["ws"])

    bias = jnp.zeros((3, HIDDEN_SIZE), jnp.float32)
    bias = bias.at[0, :].set(params["b1"][0])
    bias = bias.at[1, :].set(params["b2"][0])
    bias = bias.at[2, :action_dim].set(params["bm"][0])
    bias = bias.at[2, action_dim:2 * action_dim].set(params["bs"][0])

    return {"w1": params["w1"].astype(weight_dtype),
            "w2": params["w2"].astype(weight_dtype),
            "wh": wh.astype(weight_dtype),
            "bias": bias,                        # biases stay f32 (epilogue precision)
            "action_dim": action_dim}


def _const_index(i):
    return (0, 0)


def _resident_spec(shape):
    """Weights/bias: constant index_map -> DMA'd once, VMEM-resident across the grid.
    Single-buffered (pl.Buffered(1)) since the second pipeline buffer would never
    be used; saves ~0.2-0.4 MB VMEM and buffer bookkeeping."""
    try:
        return pl.BlockSpec(shape, _const_index, pipeline_mode=pl.Buffered(1))
    except TypeError:  # older Pallas without pipeline_mode: default double-buffering
        return pl.BlockSpec(shape, _const_index)


def _choose_batch_tile(B, tb_max):
    """Batch tile selection.

    * B <= 256: one full-array block (always BlockSpec-legal, even tiny demo batches).
    * B  > 256: tile is a multiple of 256 up to tb_max, picked so the grid has
      >= 2 steps -> v7x shards the "parallel" batch axis over its 2 TensorCores,
      while 256-1024-row tiles amortize the ~0.35 us per-grid-step overhead on
      all generations (measured sweeps: 512-1024 tiles ~85% of HBM roofline).

    VMEM ceiling note (v7x: 64 MiB physical / 32 MiB default scoped; v5e: 16 MiB
    scoped): per-step footprint ~= TB*(state_dim + 2*HIDDEN_SIZE + HEAD_PAD)*4 B
    of activations + ~0.2 MB bf16 weights, i.e. < 16 MiB even at TB=4096 -- the
    binding constraints are per-step overhead and output DMA, not VMEM.
    """
    assert tb_max >= 256 and tb_max % 256 == 0, "tb_max must be a multiple of 256"
    if B <= 256:
        return B
    half = pl.cdiv(B, 2)
    return min(tb_max, pl.cdiv(half, 256) * 256)


def actor_forward(state, packed, *, tb_max=1024, out_dtype=jnp.float32,
                  return_fused=False):
    """state: (B, state_dim) f32; packed: output of pack_actor_params.

    Returns (mean, std) by default.  For large-B training loops prefer
    return_fused=True and slice mean=fused[:, :A], std=fused[:, A:2A] inside the
    downstream jit so XLA fuses the slices with their consumers instead of
    re-reading the (B, 128) slab from HBM here.  out_dtype=jnp.bfloat16 halves
    the dominant HBM writeback if the policy tolerates bf16 actions.
    """
    B, state_dim = state.shape
    A = packed["action_dim"]

    TB = _choose_batch_tile(B, tb_max)
    grid = (pl.cdiv(B, TB),)

    fused = pl.pallas_call(
        functools.partial(actor_kernel, action_dim=A),
        out_shape=jax.ShapeDtypeStruct((B, HEAD_PAD), out_dtype),
        grid_spec=pltpu.PrefetchScalarGridSpec(
            num_scalar_prefetch=0,
            grid=grid,
            in_specs=[
                pl.BlockSpec((TB, state_dim), lambda i: (i, 0)),   # activations: tiled by grid
                _resident_spec((state_dim, HIDDEN_SIZE)),          # w1
                _resident_spec((HIDDEN_SIZE, HIDDEN_SIZE)),        # w2
                _resident_spec((HIDDEN_SIZE, HEAD_PAD)),           # fused head
                _resident_spec((3, HIDDEN_SIZE)),                  # packed biases (f32)
            ],
            out_specs=pl.BlockSpec((TB, HEAD_PAD), lambda i: (i, 0)),
        ),
        compiler_params=pltpu.CompilerParams(
            # v7x shards the batch grid over both TensorCores; no-op on v5e/v6e.
            dimension_semantics=("parallel",)),
    )(state, packed["w1"], packed["w2"], packed["wh"], packed["bias"])

    if return_fused:
        return fused
    mean = fused[:, :A]
    std = fused[:, A:2 * A]
    return mean, std


def xavier_uniform(key, fan_in, fan_out, dtype=jnp.float32):
    # Matches torch.nn.init.xavier_uniform_ with gain=1.
    bound = jnp.sqrt(6.0 / (fan_in + fan_out))
    return jax.random.uniform(key, (fan_in, fan_out), dtype=dtype,
                              minval=-bound, maxval=bound)


def init_actor_params(key, state_dim, action_dim):
    k1, k2, k3, k4 = jax.random.split(key, 4)
    return {
        "w1": xavier_uniform(k1, state_dim, HIDDEN_SIZE),
        "b1": jnp.zeros((1, HIDDEN_SIZE), jnp.float32),
        "w2": xavier_uniform(k2, HIDDEN_SIZE, HIDDEN_SIZE),
        "b2": jnp.zeros((1, HIDDEN_SIZE), jnp.float32),
        "wm": xavier_uniform(k3, HIDDEN_SIZE, action_dim),
        "bm": jnp.zeros((1, action_dim), jnp.float32),
        "ws": xavier_uniform(k4, HIDDEN_SIZE, action_dim),
        "bs": jnp.zeros((1, action_dim), jnp.float32),
    }


def actor_forward_ref(state, params, operand_dtype=jnp.float32):
    """Plain-JAX reference (matches the PyTorch module).  operand_dtype lets the
    reference use the same bf16-operand / f32-accumulation recipe as the kernel."""
    def mm(x, w):
        return jnp.dot(x.astype(operand_dtype), w.astype(operand_dtype),
                       preferred_element_type=jnp.float32)
    h = jnp.maximum(mm(state, params["w1"]) + params["b1"], 0.0)
    h = jnp.maximum(mm(h, params["w2"]) + params["b2"], 0.0)
    mean = mm(h, params["wm"]) + params["bm"]
    log_std = jnp.clip(mm(h, params["ws"]) + params["bs"], LOG_STD_MIN, LOG_STD_MAX)
    return mean, jnp.exp(log_std)


if __name__ == "__main__":
    # CartPole-like shapes: state_dim=4, action_dim=1, small batch.
    B, STATE_DIM, ACTION_DIM = 2, 4, 1

    root = jax.random.PRNGKey(0)
    k_params, k_state, k_state_big = jax.random.split(root, 3)

    params = init_actor_params(k_params, STATE_DIM, ACTION_DIM)
    packed = pack_actor_params(params, ACTION_DIM)          # bf16 MXU operands
    state = jax.random.normal(k_state, (B, STATE_DIM), dtype=jnp.float32)

    mean, std = actor_forward(state, packed)
    jax.block_until_ready((mean, std))
    assert mean.shape == (B, ACTION_DIM) and std.shape == (B, ACTION_DIM)
    assert bool(jnp.all(std > 0))

    # Loose check vs the pure-f32 reference (kernel feeds bf16 operands to the MXU)...
    mean_f32, std_f32 = actor_forward_ref(state, params)
    assert jnp.allclose(mean, mean_f32, atol=5e-2, rtol=5e-2)
    assert jnp.allclose(std, std_f32, atol=5e-2, rtol=5e-2)
    # ...and a tight check vs a reference using the same bf16-operand / f32-accum recipe.
    mean_bf, std_bf = actor_forward_ref(state, params, operand_dtype=jnp.bfloat16)
    assert jnp.allclose(mean, mean_bf, atol=5e-3, rtol=5e-3)
    assert jnp.allclose(std, std_bf, atol=5e-3, rtol=5e-3)

    # Exercise grid > 1, a partial last batch tile, and VMEM-resident weights:
    # B=300 -> TB=256, grid=(2,), last tile has 44 valid rows (OOB rows are
    # bounded by clip() and their writes are dropped by Pallas).
    B2 = 300
    state2 = jax.random.normal(k_state_big, (B2, STATE_DIM), dtype=jnp.float32)
    mean2, std2 = actor_forward(state2, packed)
    jax.block_until_ready((mean2, std2))
    assert mean2.shape == (B2, ACTION_DIM) and std2.shape == (B2, ACTION_DIM)
    mean2_bf, std2_bf = actor_forward_ref(state2, params, operand_dtype=jnp.bfloat16)
    assert jnp.allclose(mean2, mean2_bf, atol=5e-3, rtol=5e-3)
    assert jnp.allclose(std2, std2_bf, atol=5e-3, rtol=5e-3)
    assert bool(jnp.all(std2 > 0))

    # TODO(synk): Actor.sample() (rsample + tanh squash + log_prob) is stochastic
    # policy-sampling glue, not the hot path; only forward() is kernelized here.
    print("KERNEL_OK")
</pallas_src>

<mosaic_0001>
module attributes {stable_mosaic.version = 11 : i64} {
  func.func @actor_kernel(%arg0: i32, %arg1: memref<2x4xf32, #tpu.memory_space<vmem>>, %arg2: memref<4x256xbf16, #tpu.memory_space<vmem>>, %arg3: memref<256x256xbf16, #tpu.memory_space<vmem>>, %arg4: memref<256x128xbf16, #tpu.memory_space<vmem>>, %arg5: memref<3x256xf32, #tpu.memory_space<vmem>>, %arg6: memref<2x128xf32, #tpu.memory_space<vmem>>) attributes {dimension_semantics = [#tpu.dimension_semantics<parallel>], iteration_bounds = array<i64: 1>, scalar_prefetch = 0 : i64, scratch_operands = 0 : i64, tpu.core_type = #tpu.core_type<tc>, window_params = [{transform_indices = @transform_0, window_bounds = array<i64: 2, 4>}, {pipeline_mode = #tpu.pipeline_mode<synchronous>, transform_indices = @transform_1, window_bounds = array<i64: 4, 256>}, {pipeline_mode = #tpu.pipeline_mode<synchronous>, transform_indices = @transform_2, window_bounds = array<i64: 256, 256>}, {pipeline_mode = #tpu.pipeline_mode<synchronous>, transform_indices = @transform_3, window_bounds = array<i64: 256, 128>}, {pipeline_mode = #tpu.pipeline_mode<synchronous>, transform_indices = @transform_4, window_bounds = array<i64: 3, 256>}, {transform_indices = @transform_5, window_bounds = array<i64: 2, 128>}]} {
    %c0 = arith.constant 0 : index
    %c0_0 = arith.constant 0 : index
    %0 = vector.load %arg1[%c0, %c0_0] : memref<2x4xf32, #tpu.memory_space<vmem>>, vector<2x4xf32>
    %1 = arith.truncf %0 : vector<2x4xf32> to vector<2x4xbf16>
    %c0_1 = arith.constant 0 : index
    %c0_2 = arith.constant 0 : index
    %2 = vector.load %arg2[%c0_1, %c0_2] : memref<4x256xbf16, #tpu.memory_space<vmem>>, vector<4x256xbf16>
    %cst = arith.constant dense<0.000000e+00> : vector<2x256xf32>
    %3 = tpu.matmul %1, %2, %cst {dimension_numbers = #tpu.dot_dimension_numbers<[1], [0], [0], [1], [0, 0, 1, 1], [], []>} : vector<2x4xbf16>, vector<4x256xbf16>, vector<2x256xf32> -> vector<2x256xf32>
    %c0_3 = arith.constant 0 : index
    %c0_4 = arith.constant 0 : index
    %4 = vector.load %arg5[%c0_3, %c0_4] : memref<3x256xf32, #tpu.memory_space<vmem>>, vector<1x256xf32>
    %5 = vector.broadcast %4 : vector<1x256xf32> to vector<2x256xf32>
    %6 = arith.addf %3, %5 : vector<2x256xf32>
    %cst_5 = arith.constant 0.000000e+00 : f32
    %7 = vector.broadcast %cst_5 : f32 to vector<2x256xf32>
    %8 = arith.maximumf %6, %7 : vector<2x256xf32>
    %9 = arith.truncf %8 : vector<2x256xf32> to vector<2x256xbf16>
    %c0_6 = arith.constant 0 : index
    %c0_7 = arith.constant 0 : index
    %10 = vector.load %arg3[%c0_6, %c0_7] : memref<256x256xbf16, #tpu.memory_space<vmem>>, vector<256x256xbf16>
    %cst_8 = arith.constant dense<0.000000e+00> : vector<2x256xf32>
    %11 = tpu.matmul %9, %10, %cst_8 {dimension_numbers = #tpu.dot_dimension_numbers<[1], [0], [0], [1], [0, 0, 1, 1], [], []>} : vector<2x256xbf16>, vector<256x256xbf16>, vector<2x256xf32> -> vector<2x256xf32>
    %c1 = arith.constant 1 : index
    %c0_9 = arith.constant 0 : index
    %12 = vector.load %arg5[%c1, %c0_9] : memref<3x256xf32, #tpu.memory_space<vmem>>, vector<1x256xf32>
    %13 = vector.broadcast %12 : vector<1x256xf32> to vector<2x256xf32>
    %14 = arith.addf %11, %13 : vector<2x256xf32>
    %cst_10 = arith.constant 0.000000e+00 : f32
    %15 = vector.broadcast %cst_10 : f32 to vector<2x256xf32>
    %16 = arith.maximumf %14, %15 : vector<2x256xf32>
    %17 = arith.truncf %16 : vector<2x256xf32> to vector<2x256xbf16>
    %c0_11 = arith.constant 0 : index
    %c0_12 = arith.constant 0 : index
    %18 = vector.load %arg4[%c0_11, %c0_12] : memref<256x128xbf16, #tpu.memory_space<vmem>>, vector<256x128xbf16>
    %cst_13 = arith.constant dense<0.000000e+00> : vector<2x128xf32>
    %19 = tpu.matmul %17, %18, %cst_13 {dimension_numbers = #tpu.dot_dimension_numbers<[1], [0], [0], [1], [0, 0, 1, 1], [], []>} : vector<2x256xbf16>, vector<256x128xbf16>, vector<2x128xf32> -> vector<2x128xf32>
    %c2 = arith.constant 2 : index
    %c0_14 = arith.constant 0 : index
    %20 = vector.load %arg5[%c2, %c0_14] : memref<3x256xf32, #tpu.memory_space<vmem>>, vector<1x128xf32>
    %21 = vector.broadcast %20 : vector<1x128xf32> to vector<2x128xf32>
    %22 = arith.addf %19, %21 : vector<2x128xf32>
    %23 = tpu.iota {dimensions = array<i32: 1>} : vector<2x128xi32>
    %c1_i32 = arith.constant 1 : i32
    %24 = vector.broadcast %c1_i32 : i32 to vector<2x128xi32>
    %25 = arith.cmpi sge, %23, %24 : vector<2x128xi32>
    %c2_i32 = arith.constant 2 : i32
    %26 = vector.broadcast %c2_i32 : i32 to vector<2x128xi32>
    %27 = arith.cmpi slt, %23, %26 : vector<2x128xi32>
    %28 = arith.andi %25, %27 : vector<2x128xi1>
    %cst_15 = arith.constant -2.000000e+01 : f32
    %cst_16 = arith.constant 2.000000e+00 : f32
    %29 = vector.broadcast %cst_15 : f32 to vector<2x128xf32>
    %30 = arith.maximumf %29, %22 : vector<2x128xf32>
    %31 = vector.broadcast %cst_16 : f32 to vector<2x128xf32>
    %32 = arith.minimumf %31, %30 : vector<2x128xf32>
    %33 = math.exp %32 : vector<2x128xf32>
    %34 = arith.select %28, %33, %22 : vector<2x128xi1>, vector<2x128xf32>
    %c0_17 = arith.constant 0 : index
    %c0_18 = arith.constant 0 : index
    %35 = vector.load %arg6[%c0_17, %c0_18] : memref<2x128xf32, #tpu.memory_space<vmem>>, vector<2x128xf32>
    tpu.vector_store %arg6[%c0_17, %c0_18], %34 {strides = array<i32>} : memref<2x128xf32, #tpu.memory_space<vmem>>, vector<2x128xf32>,
    return
  }
  func.func @transform_0(%arg0: i32) -> (i32, i32) {
    %c0_i32 = arith.constant 0 : i32
    %c0_i32_0 = arith.constant 0 : i32
    return %arg0, %c0_i32 : i32, i32
  }
  func.func @transform_1(%arg0: i32) -> (i32, i32) {
    %c0_i32 = arith.constant 0 : i32
    %c0_i32_0 = arith.constant 0 : i32
    %c0_i32_1 = arith.constant 0 : i32
    return %c0_i32, %c0_i32_0 : i32, i32
  }
  func.func @transform_2(%arg0: i32) -> (i32, i32) {
    %c0_i32 = arith.constant 0 : i32
    %c0_i32_0 = arith.constant 0 : i32
    %c0_i32_1 = arith.constant 0 : i32
    return %c0_i32, %c0_i32_0 : i32, i32
  }
  func.func @transform_3(%arg0: i32) -> (i32, i32) {
    %c0_i32 = arith.constant 0 : i32
    %c0_i32_0 = arith.constant 0 : i32
    %c0_i32_1 = arith.constant 0 : i32
    return %c0_i32, %c0_i32_0 : i32, i32
  }
  func.func @transform_4(%arg0: i32) -> (i32, i32) {
    %c0_i32 = arith.constant 0 : i32
    %c0_i32_0 = arith.constant 0 : i32
    %c0_i32_1 = arith.constant 0 : i32
    return %c0_i32, %c0_i32_0 : i32, i32
  }
  func.func @transform_5(%arg0: i32) -> (i32, i32) {
    %c0_i32 = arith.constant 0 : i32
    %c0_i32_0 = arith.constant 0 : i32
    return %arg0, %c0_i32 : i32, i32
  }
}

</mosaic_0001>

<bundles_post_ra>
// kernel: tpu_custom_call.1
= control target key start
LH: loop header
LB: loop body
LE: loop exit
PB: predicated region body
PF: predicated region fallthrough
CT: control target
= control target key end

     0   :  { %10 = vsyncpa [#allocation3], 0  ;;  %s982_s0 = inlined_call_operand.hbm [shape: f32[2,4], index: 0, kind: input, shape index: {}]   ;;  %s983_s1 = inlined_call_operand.hbm [shape: bf16[4,256], index: 1, kind: input, shape index: {}]   ;;  %s984_s2 = inlined_call_operand.hbm [shape: bf16[256,256], index: 2, kind: input, shape index: {}]   ;;  %s985_s3 = inlined_call_operand.hbm [shape: bf16[256,128], index: 3, kind: input, shape index: {}]   ;;  %s986_s4 = inlined_call_operand.vmem [shape: f32[3,256], index: 4, kind: input, shape index: {}]   ;;  %s987_s5 = inlined_call_operand.hbm [shape: f32[2,128], index: 5, kind: output, shape index: {}]  }
   0x1   :  { %11 = vsyncpa [#allocation6], 0 }
   0x2   :  { %12 = vsyncpa [#allocation9], 0 }
   0x3   :  { %13 = vsyncpa [#allocation4], 0  ;;  %s873_s18 = smov [#allocation5]   ;;  %s874_s20 = smov [#allocation2]  }
   0x4   :  { %s30_s19 = sshll.u32 %s873_s18, 4  ;;  %s20_s21 = sshll.u32 %s874_s20, 4  ;;  %s31_s19 = int_to_ptr.vmem [resolvable:$true] %s30_s19  ;;  %s21_s21 = int_to_ptr.vmem [resolvable:$true] %s20_s21 }
   0x5   :  { %s755_s24 = scalar_lea.hbm %s983_s1, 64 }
   0x6   :  { %p756_p0 = scmp.ne.s32.totalorder %s983_s1, %s755_s24  ;;  %p759_p1 = scmp.lt.u32.totalorder %s755_s24, %s983_s1 }
   0x8   :  { %p761_p2 = pnand %p759_p1, %p756_p0 }
   0xa   :  { %764 = shalt.err (!%p761_p2)
}
   0xb   :  { %s765_s29 = scalar_lea.vmem %s31_s19, 64  ;;  %p770_p4 = scmp.lt.s32.totalorder %s31_s19, %s31_s19 }
   0xc   :  { %p766_p3 = scmp.ne.s32.totalorder %s31_s19, %s765_s29  ;;  %p771_p5 = scmp.lt.s32.totalorder %s765_s29, %s765_s29 }
   0xe   :  { %p772_p6 = por %p771_p5, %p770_p4 }
  0x10   :  { %p773_p7 = pnand %p772_p6, %p766_p3 }
  0x12   :  { %776 = shalt.err (!%p773_p7)
}
  0x13   :  { %33 = dma.hbm_to_vmem [thread:$0]  %s983_s1, 64, %s31_s19, [#allocation6]  }
  0x14   :  { %s777_s9 = scalar_lea.hbm %s982_s0, 32 }
  0x15   :  { %p778_p8 = scmp.ne.s32.totalorder %s982_s0, %s777_s9  ;;  %p781_p9 = scmp.lt.u32.totalorder %s777_s9, %s982_s0 }
  0x17   :  { %p783_p10 = pnand %p781_p9, %p778_p8 }
  0x19   :  { %786 = shalt.err (!%p783_p10)
}
  0x1a   :  { %s787_s14 = scalar_lea.vmem %s21_s21, 32  ;;  %p792_p12 = scmp.lt.s32.totalorder %s21_s21, %s21_s21 }
  0x1b   :  { %p788_p11 = scmp.ne.s32.totalorder %s21_s21, %s787_s14  ;;  %p793_p13 = scmp.lt.s32.totalorder %s787_s14, %s787_s14 }
  0x1d   :  { %p794_p0 = por %p793_p13, %p792_p12 }
  0x1f   :  { %p795_p1 = pnand %p794_p0, %p788_p11 }
  0x21   :  { %798 = shalt.err (!%p795_p1)
}
  0x22   :  { %23 = dma.hbm_to_vmem [thread:$0]  %s982_s0, 32, %s21_s21, [#allocation3]  }
  0x23   :  { %s875_s16 = smov [#allocation7]   ;;  %s799_s20 = scalar_lea.hbm %s984_s2, 4096 }
  0x24   :  { %s39_s17 = sshll.u32 %s875_s16, 4  ;;  %p800_p2 = scmp.ne.s32.totalorder %s984_s2, %s799_s20  ;;  %s40_s17 = int_to_ptr.vmem [resolvable:$true] %s39_s17 }
  0x25   :  { %p803_p3 = scmp.lt.u32.totalorder %s799_s20, %s984_s2 }
  0x27   :  { %p805_p4 = pnand %p803_p3, %p800_p2 }
  0x29   :  { %808 = shalt.err (!%p805_p4)
}
  0x2a   :  { %s809_s26 = scalar_lea.vmem %s40_s17, 4096  ;;  %p814_p6 = scmp.lt.s32.totalorder %s40_s17, %s40_s17 }
  0x2b   :  { %p810_p5 = scmp.ne.s32.totalorder %s40_s17, %s809_s26  ;;  %p815_p7 = scmp.lt.s32.totalorder %s809_s26, %s809_s26 }
  0x2d   :  { %p816_p8 = por %p815_p7, %p814_p6 }
  0x2f   :  { %p817_p9 = pnand %p816_p8, %p810_p5 }
  0x31   :  { %820 = shalt.err (!%p817_p9)
}
  0x32   :  { %s876_s0 = smov 128   ;;  %s877_s21 = smov 8  }
  0x33   :  { %45 = dma.hbm_to_vmem [thread:$0]  %s984_s2, 4096, %s40_s17, [#allocation6], %s876_s0, %s876_s0, %s877_s21  }
  0x34   :  { %s878_s29 = smov [#allocation8]   ;;  %s821_s8 = scalar_lea.hbm %s985_s3, 2048 }
  0x35   :  { %s51_s30 = sshll.u32 %s878_s29, 4  ;;  %p822_p10 = scmp.ne.s32.totalorder %s985_s3, %s821_s8  ;;  %s52_s30 = int_to_ptr.vmem [resolvable:$true] %s51_s30 }
  0x36   :  { %p825_p11 = scmp.lt.u32.totalorder %s821_s8, %s985_s3 }
  0x38   :  { %p827_p12 = pnand %p825_p11, %p822_p10 }
  0x3a   :  { %830 = shalt.err (!%p827_p12)
}
  0x3b   :  { %s831_s13 = scalar_lea.vmem %s52_s30, 2048  ;;  %p836_p0 = scmp.lt.s32.totalorder %s52_s30, %s52_s30 }
  0x3c   :  { %p832_p13 = scmp.ne.s32.totalorder %s52_s30, %s831_s13  ;;  %p837_p1 = scmp.lt.s32.totalorder %s831_s13, %s831_s13 }
  0x3e   :  { %p838_p2 = por %p837_p1, %p836_p0 }
  0x40   :  { %p839_p3 = pnand %p838_p2, %p832_p13 }
  0x42   :  { %842 = shalt.err (!%p839_p3)
}
  0x43   :  { %s879_s2 = smov 64   ;;  %s880_s14 = smov 4  }
  0x44   :  { %57 = dma.hbm_to_vmem [thread:$0]  %s985_s3, 2048, %s52_s30, [#allocation9], %s879_s2, %s879_s2, %s880_s14  }
  0x45   :  { %865 = dma.done.wait [#allocation3], 32  }
  0x46   :  { %866 = vsyncadd [#allocation3], 4294967264 }
  0x47   :  { %867 = dma.done.wait [#allocation6], 4160  }
  0x48   :  { %868 = vsyncadd [#allocation6], 4294963136 }
  0x49   :  { %869 = dma.done.wait [#allocation9], 2048  }
  0x4a   :  { %870 = vsyncadd [#allocation9], 4294965248  ;;  %v881_v0 = vmov 0   ;;  %vm101_vm0 = vcmask 1041408   ;;  %v73_v2 = vld [vmem:[#allocation2] sm:$0x3]  ;;  %v78_v50 = vlaneseq }
  0x4b   :  { %140 = vmatprep.mubr.bf16.mxu0 %v881_v0  ;;  %v604_v1 = vld.sshfl [vmem:[#allocation5] sm:$0x33 pattern:$0x76325410]  ;;  %v689_v5 = vld [vmem:[#allocation7 + $0x4] ss:$8 sps:$4 sm:$0xff]   ;;  %v74_v7 = vpack.c.bf16 %v73_v2, %v73_v2 }
  0x4c   :  { %v96_v3 = vcombine.high %v604_v1, %v604_v1  ;;  %v103_v4 = vsel %vm101_vm0, %v604_v1, 0  ;;  %v691_v6 = vld [vmem:[#allocation7] ss:$8 sps:$4 sm:$0xff]   ;;  %358 = vmatprep.subr.bf16.mxu1 %v689_v5  ;;  %v692_v8 = vld [vmem:[#allocation7 + $0x14] ss:$8 sps:$4 sm:$0xff]   ;;  %vm97_vm1 = vcmask 31744  }
  0x4d   :  { %359 = vmatpush1.bf16.msra.mxu1 %v691_v6  ;;  %v694_v9 = vld [vmem:[#allocation7 + $0x10] ss:$8 sps:$4 sm:$0xff]   ;;  %v695_v10 = vld [vmem:[#allocation7 + $0x24] ss:$8 sps:$4 sm:$0xff]   ;;  %v697_v11 = vld [vmem:[#allocation7 + $0x20] ss:$8 sps:$4 sm:$0xff]  }
  0x4e   :  { %605 = vmatprep.subr.msk.bf16.mxu0 %vm101_vm0, %v96_v3  ;;  %360 = vmatprep.subr.bf16.mxu1 %v692_v8  ;;  %v698_v12 = vld [vmem:[#allocation7 + $0x34] ss:$8 sps:$4 sm:$0xff]   ;;  %v700_v13 = vld [vmem:[#allocation7 + $0x30] ss:$8 sps:$4 sm:$0xff]   ;;  %v701_v14 = vld [vmem:[#allocation7 + $0x44] ss:$8 sps:$4 sm:$0xff]  }
  0x4f   :  { %109 = vmatpush1.bf16.msra.mxu0 %v103_v4  ;;  %v703_v15 = vld [vmem:[#allocation7 + $0x40] ss:$8 sps:$4 sm:$0xff]   ;;  %v704_v16 = vld [vmem:[#allocation7 + $0x54] ss:$8 sps:$4 sm:$0xff]   ;;  %v706_v17 = vld [vmem:[#allocation7 + $0x50] ss:$8 sps:$4 sm:$0xff]  }
  0x50   :  { %v707_v18 = vld [vmem:[#allocation7 + $0x64] ss:$8 sps:$4 sm:$0xff]   ;;  %v709_v19 = vld [vmem:[#allocation7 + $0x60] ss:$8 sps:$4 sm:$0xff]   ;;  %v710_v20 = vld [vmem:[#allocation7 + $0x74] ss:$8 sps:$4 sm:$0xff]  }
  0x51   :  { %361 = vmatpush1.bf16.msra.mxu1 %v694_v9  ;;  %v712_v21 = vld [vmem:[#allocation7 + $0x70] ss:$8 sps:$4 sm:$0xff]   ;;  %v713_v22 = vld [vmem:[#allocation7 + $0x84] ss:$8 sps:$4 sm:$0xff]   ;;  %v715_v23 = vld [vmem:[#allocation7 + $0x80] ss:$8 sps:$4 sm:$0xff]  }
  0x52   :  { %606 = vmatmul.mubr.msk.bf16.vlgmr.msra.gmra.mrb[0].mxu0 %vm97_vm1, %v74_v7  ;;  %362 = vmatprep.subr.bf16.mxu1 %v695_v10  ;;  %v716_v24 = vld [vmem:[#allocation7 + $0x94] ss:$8 sps:$4 sm:$0xff]   ;;  %v718_v25 = vld [vmem:[#allocation7 + $0x90] ss:$8 sps:$4 sm:$0xff]   ;;  %v719_v26 = vld [vmem:[#allocation7 + $0xa4] ss:$8 sps:$4 sm:$0xff]  }
  0x53   :  { %v721_v27 = vld [vmem:[#allocation7 + $0xa0] ss:$8 sps:$4 sm:$0xff]   ;;  %v722_v28 = vld [vmem:[#allocation7 + $0xb4] ss:$8 sps:$4 sm:$0xff]   ;;  %v724_v29 = vld [vmem:[#allocation7 + $0xb0] ss:$8 sps:$4 sm:$0xff]  }
  0x54   :  { %v725_v30 = vld [vmem:[#allocation7 + $0xc4] ss:$8 sps:$4 sm:$0xff]   ;;  %v727_v31 = vld [vmem:[#allocation7 + $0xc0] ss:$8 sps:$4 sm:$0xff]   ;;  %v728_v32 = vld [vmem:[#allocation7 + $0xd4] ss:$8 sps:$4 sm:$0xff]  }
  0x55   :  { %363 = vmatpush1.bf16.msra.mxu1 %v697_v11  ;;  %v730_v33 = vld [vmem:[#allocation7 + $0xd0] ss:$8 sps:$4 sm:$0xff]   ;;  %v731_v34 = vld [vmem:[#allocation7 + $0xe4] ss:$8 sps:$4 sm:$0xff]   ;;  %v733_v35 = vld [vmem:[#allocation7 + $0xe0] ss:$8 sps:$4 sm:$0xff]  }
  0x56   :  { %364 = vmatprep.subr.bf16.mxu1 %v698_v12  ;;  %v734_v36 = vld [vmem:[#allocation7 + $0xf4] ss:$8 sps:$4 sm:$0xff]   ;;  %v736_v37 = vld [vmem:[#allocation7 + $0xf0] ss:$8 sps:$4 sm:$0xff]   ;;  %v737_v38 = vld [vmem:[#allocation8 + $0x40] sm:$0xff]   ;;  %v79_v51 = vshrl.u32 %v78_v50, 7 }
  0x57   :  { %v738_v39 = vld [vmem:[#allocation8] sm:$0xff]   ;;  %v739_v40 = vld [vmem:[#allocation8 + $0x48] sm:$0xff]   ;;  %657 = vmatprep.subr.bf16.mxu0 %v737_v38  ;;  %v741_v42 = vld [vmem:[#allocation8 + $0x50] sm:$0xff]   ;;  %s882_s22 = smov [#allocation10]  }
  0x58   :  { %658 = vmatpush3.bf16.msra.mxu0 %v738_v39  ;;  %v740_v41 = vld [vmem:[#allocation8 + $0x8] sm:$0xff]   ;;  %v742_v43 = vld [vmem:[#allocation8 + $0x10] sm:$0xff]   ;;  %v743_v44 = vld [vmem:[#allocation8 + $0x58] sm:$0xff]   ;;  %v80_v52 = vsub.s32 0, %v79_v51  ;;  %v84_v54 = vsub.s32 1, %v79_v51  ;;  %s593_s23 = sshll.u32 %s882_s22, 4  ;;  %s594_s23 = int_to_ptr.vmem [resolvable:$true] %s593_s23 }
  0x59   :  { %365 = vmatpush1.bf16.msra.mxu1 %v700_v13  ;;  %659 = vmatprep.subr.bf16.mxu0 %v739_v40  ;;  %v744_v45 = vld [vmem:[#allocation8 + $0x18] sm:$0xff]   ;;  %v745_v46 = vld [vmem:[#allocation8 + $0x60] sm:$0xff]   ;;  %v747_v48 = vld [vmem:[#allocation8 + $0x68] sm:$0xff]   ;;  %p848_p5 = scmp.lt.s32.totalorder %s594_s23, %s594_s23 }
  0x5a   :  { %366 = vmatprep.subr.bf16.mxu1 %v701_v14  ;;  %v746_v47 = vld [vmem:[#allocation8 + $0x20] sm:$0xff]   ;;  %v748_v49 = vld [vmem:[#allocation8 + $0x28] sm:$0xff]   ;;  %v76_v53 = vld [vmem:[%s986_s4] ss:$4 sm:$0x3] }
  0x5b   :  { %v81_v55 = vrot.slane %v76_v53, %v80_v52  ;;  %v85_v56 = vrot.slane %v76_v53, %v84_v54  ;;  %v749_v3 = vld [vmem:[#allocation8 + $0x70] sm:$0xff]   ;;  %v751_v5 = vld [vmem:[#allocation8 + $0x78] sm:$0xff]  }
  0x5c   :  { %660 = vmatpush3.bf16.msra.mxu0 %v740_v41  ;;  %v750_v4 = vld [vmem:[#allocation8 + $0x30] sm:$0xff]   ;;  %v752_v6 = vld [vmem:[#allocation8 + $0x38] sm:$0xff]  }
  0x5d   :  { %367 = vmatpush1.bf16.msra.mxu1 %v703_v15  ;;  %661 = vmatprep.subr.bf16.mxu0 %v741_v42  ;;  %v607_v7 = vld [vmem:[%s986_s4 + $0x1] ss:$4 sm:$0x3] }
  0x5e   :  { %368 = vmatprep.subr.bf16.mxu1 %v704_v16  ;;  %v191_v8 = vrot.slane %v607_v7, %v80_v52  ;;  %v195_v9 = vrot.slane %v607_v7, %v84_v54 }
  0x60   :  { %662 = vmatpush3.bf16.msra.mxu0 %v742_v43 }
  0x61   :  { %369 = vmatpush1.bf16.msra.mxu1 %v706_v17  ;;  %663 = vmatprep.subr.bf16.mxu0 %v743_v44 }
  0x62   :  { %370 = vmatprep.subr.bf16.mxu1 %v707_v18 }
  0x64   :  { %664 = vmatpush3.bf16.msra.mxu0 %v744_v45 }
  0x65   :  { %371 = vmatpush1.bf16.msra.mxu1 %v709_v19  ;;  %665 = vmatprep.subr.bf16.mxu0 %v745_v46 }
  0x66   :  { %372 = vmatprep.subr.bf16.mxu1 %v710_v20 }
  0x68   :  { %666 = vmatpush3.bf16.msra.mxu0 %v746_v47 }
  0x69   :  { %373 = vmatpush1.bf16.msra.mxu1 %v712_v21  ;;  %667 = vmatprep.subr.bf16.mxu0 %v747_v48  ;;  %v640_v21 = vld [vmem:[%s986_s4 + $0x2] ss:$0 sm:$0xff]  ;;  %s843_s4 = scalar_lea.vmem %s594_s23, 32 }
  0x6a   :  { %374 = vmatprep.subr.bf16.mxu1 %v713_v22  ;;  %p844_p4 = scmp.ne.s32.totalorder %s594_s23, %s843_s4  ;;  %p849_p6 = scmp.lt.s32.totalorder %s843_s4, %s843_s4 }
  0x6c   :  { %668 = vmatpush3.bf16.msra.mxu0 %v748_v49  ;;  %p850_p7 = por %p849_p6, %p848_p5 }
  0x6d   :  { %375 = vmatpush1.bf16.msra.mxu1 %v715_v23  ;;  %669 = vmatprep.subr.bf16.mxu0 %v749_v3 }
  0x6e   :  { %376 = vmatprep.subr.bf16.mxu1 %v716_v24  ;;  %p851_p8 = pnand %p850_p7, %p844_p4 }
  0x70   :  { %670 = vmatpush3.bf16.msra.mxu0 %v750_v4 }
  0x71   :  { %377 = vmatpush1.bf16.msra.mxu1 %v718_v25  ;;  %671 = vmatprep.subr.bf16.mxu0 %v751_v5 }
  0x72   :  { %378 = vmatprep.subr.bf16.mxu1 %v719_v26 }
  0x74   :  { %672 = vmatpush3.bf16.msra.mxu0 %v752_v6 }
  0x75   :  { %379 = vmatpush1.bf16.msra.mxu1 %v721_v27 }
  0x76   :  { %380 = vmatprep.subr.bf16.mxu1 %v722_v28 }
  0x79   :  { %381 = vmatpush1.bf16.msra.mxu1 %v724_v29 }
  0x7a   :  { %382 = vmatprep.subr.bf16.mxu1 %v725_v30  ;;  %v577_v30 = vand.u32 127, %v78_v50 }
  0x7c   :  { %vm578_vm2 = vcmp.ge.s32.totalorder %v577_v30, 1  ;;  %vm579_vm3 = vcmp.lt.s32.totalorder %v577_v30, 2 }
  0x7d   :  { %383 = vmatpush1.bf16.msra.mxu1 %v727_v31  ;;  %vm580_vm4 = vmand %vm578_vm2, %vm579_vm3 }
  0x7e   :  { %384 = vmatprep.subr.bf16.mxu1 %v728_v32 }
  0x81   :  { %385 = vmatpush1.bf16.msra.mxu1 %v730_v33 }
  0x82   :  { %386 = vmatprep.subr.bf16.mxu1 %v731_v34 }
  0x85   :  { %387 = vmatpush1.bf16.msra.mxu1 %v733_v35 }
  0x86   :  { %388 = vmatprep.subr.bf16.mxu1 %v734_v36 }
  0x89   :  { %389 = vmatpush1.bf16.msra.mxu1 %v736_v37 }
 0x125   :  { %v142_v57 = vpop.f32.mrb[0].mxu0 }
 0x126   :  { %v143_v58 = vadd.f32 %v142_v57, %v81_v55  ;;  %v144_v59 = vpop.f32.mrb[1].mxu0 }
 0x127   :  { %v145_v60 = vadd.f32 %v144_v59, %v85_v56  ;;  %v146_v61 = vpop.f32.mrb[2].mxu0 }
 0x128   :  { %v149_v62 = vmax.f32 %v143_v58, 0.0  ;;  %v147_v63 = vpop.f32.mrb[3].mxu0 }
 0x129   :  { %v150_v0 = vmax.f32 %v145_v60, 0.0 }
 0x12a   :  { %v151_v2 = vpack.c.bf16 %v149_v62, %v149_v62 }
 0x12b   :  { %v152_v1 = vpack.c.bf16 %v150_v0, %v150_v0 }
 0x12d   :  { %390 = vmatprep.mubr.bf16.mxu1 %v152_v1 }
 0x12e   :  { %391 = vmatmul.mubr.bf16.vlgmr.msra.gmra.mrb[0].mxu1 %v151_v2 }
 0x201   :  { %v392_v10 = vpop.f32.mrb[0].mxu1 }
 0x202   :  { %v393_v11 = vadd.f32 %v392_v10, %v191_v8  ;;  %v394_v12 = vpop.f32.mrb[1].mxu1 }
 0x203   :  { %v395_v13 = vadd.f32 %v394_v12, %v195_v9  ;;  %v396_v14 = vpop.f32.mrb[2].mxu1 }
 0x204   :  { %v399_v15 = vmax.f32 %v393_v11, 0.0  ;;  %v397_v16 = vpop.f32.mrb[3].mxu1 }
 0x205   :  { %v400_v17 = vmax.f32 %v395_v13, 0.0 }
 0x206   :  { %v401_v19 = vpack.c.bf16 %v399_v15, %v399_v15 }
 0x207   :  { %v402_v18 = vpack.c.bf16 %v400_v17, %v400_v17 }
 0x209   :  { %568 = vmatprep.mubr.bf16.mxu0 %v402_v18 }
 0x20a   :  { %569 = vmatmul.mubr.bf16.vlgmr.msra.gmra.mrb[4].mxu0 %v401_v19 }
 0x2dd   :  { %v673_v20 = vpop.f32.mrb[4].mxu0 }
 0x2de   :  { %v674_v22 = vpop.f32.mrb[5].mxu0 }
 0x2df   :  { %v675_v23 = vadd.f32 %v674_v22, %v673_v20  ;;  %v676_v24 = vpop.f32.mrb[6].mxu0 }
 0x2e0   :  { %v677_v25 = vpop.f32.mrb[7].mxu0 }
 0x2e1   :  { %v571_v26 = vadd.f32 %v675_v23, %v640_v21 }
 0x2e3   :  { %v581_v27 = vmax.f32 %v571_v26, -20.0 }
 0x2e5   :  { %v582_v28 = vmin.f32 %v581_v27, 2.0 }
 0x2e7   :  { %v583_v29 = vmul.f32 1.442695, %v582_v28 }
 0x2e9   :  { %753 = vpow2.f32 %v583_v29 }
 0x2f3   :  { %v754_v31 = vpop.eup %753 }
 0x2f4   :  { %v585_v32 = vsel %vm580_vm4, %v754_v31, %v571_v26 }
 0x2f5   :  { %586 = vst [vmem:[#allocation10] sm:$0x3] %v585_v32 }
 0x2f6   :  { %854 = shalt.err (!%p851_p8)
}
 0x2f7   :  { %s855_s26 = scalar_lea.hbm %s987_s5, 32 }
 0x2f8   :  { %p856_p9 = scmp.ne.s32.totalorder %s987_s5, %s855_s26  ;;  %p859_p10 = scmp.lt.u32.totalorder %s855_s26, %s987_s5 }
 0x2fa   :  { %p861_p11 = pnand %p859_p10, %p856_p9 }
 0x2fc   :  { %864 = shalt.err (!%p861_p11)
}
 0x2fd   :  { %596 = dma.vmem_to_hbm [thread:$0]  %s594_s23, 32, %s987_s5, [#allocation4]  }
 0x2fe   :  { %871 = dma.done.wait [#allocation4], 32  }
 0x2ff   :  { %872 = vsyncadd [#allocation4], 4294967264 }
 0x300   :  { %600 = vsyncpa [#allocation3], 1 }
 0x301   :  { %601 = vsyncpa [#allocation6], 1 }
 0x302   :  { %602 = vsyncpa [#allocation9], 1 }
 0x303   :  { %603 = vsyncpa [#allocation4], 1 }

</bundles_post_ra>
